<compile_context>
chip_gen: v7x
topology: tpu7x:2x2x1
jax: 0.10.0
libtpu: 0.0.40
codegen_flags: <defaults>
</compile_context>

<pallas_src>
import functools

import jax
import jax.numpy as jnp
from jax.experimental import pallas as pl
from jax.experimental.pallas import tpu as pltpu


def _round_up(x, m):
    return ((x + m - 1) // m) * m


def _round_down(x, m):
    return (x // m) * m


def _select_tiles(R, HW, itemsize, target_tile_bytes, sublane):
    """Pick (row_tile, hw_tile) by byte budget; keep >=2 row grid steps."""
    hw_pad = _round_up(HW, 128)
    # Widest lane-aligned hw tile such that >= `sublane` rows fit the budget.
    hw_cap = max(128, _round_down(target_tile_bytes // (sublane * itemsize), 128))
    hw_tile = min(hw_pad, hw_cap)
    # Rows per tile to hit the byte budget (sublane-aligned, capped at R).
    row_tile = _round_down(target_tile_bytes // (hw_tile * itemsize), sublane)
    row_tile = max(sublane, min(row_tile, _round_up(R, sublane)))
    # v7x megacore: the 'parallel' row axis only shards across the 2 TCs if it
    # has >= 2 grid steps; shrink the row tile when it would be a single step.
    if R > sublane and pl.cdiv(R, row_tile) < 2:
        row_tile = max(sublane, _round_up(pl.cdiv(R, 2), sublane))
    return row_tile, hw_tile


def pooled_mean_kernel(x_ref, o_ref, *, inv_hw, hw, hw_tile, need_mask):
    """Accumulate per-row spatial sums directly into the resident output block."""
    j = pl.program_id(1)

    @pl.when(j == 0)
    def _():
        o_ref[...] = jnp.zeros_like(o_ref)

    x = x_ref[...].astype(jnp.float32)          # f32 accumulation for bf16 inputs
    if need_mask:                               # trace-time decision: only when HW % hw_tile != 0
        col = jax.lax.broadcasted_iota(jnp.int32, x.shape, 1) + j * hw_tile
        x = jnp.where(col < hw, x, 0.0)
    o_ref[...] += jnp.sum(x, axis=1, keepdims=True)

    @pl.when(j == pl.num_programs(1) - 1)
    def _():
        o_ref[...] *= inv_hw                    # scale once at finalize


def channel_attention(x, *, target_tile_bytes=8 * 1024 * 1024):
    """x: (N, C, H, W) -> (N, 1, 1, 1) float32 (Channel_Attention.forward)."""
    N, C, H, W = x.shape
    HW = H * W
    R = N * C
    # Pure bitcast of a row-major array (no relayout copy); the kernel streams
    # the (N*C, H*W) view.
    x2 = x.reshape(R, HW)

    itemsize = x.dtype.itemsize
    sublane = {1: 32, 2: 16, 4: 8}.get(itemsize, 8)   # dtype-dependent min sublane
    row_tile, hw_tile = _select_tiles(R, HW, itemsize, target_tile_bytes, sublane)
    grid = (pl.cdiv(R, row_tile), pl.cdiv(HW, hw_tile))
    need_mask = (HW % hw_tile) != 0

    pooled = pl.pallas_call(
        functools.partial(
            pooled_mean_kernel,
            inv_hw=1.0 / HW, hw=HW, hw_tile=hw_tile, need_mask=need_mask),
        out_shape=jax.ShapeDtypeStruct((R, 1), jnp.float32),
        grid=grid,
        in_specs=[pl.BlockSpec((row_tile, hw_tile), lambda i, j: (i, j))],
        out_specs=pl.BlockSpec((row_tile, 1), lambda i, j: (i, 0)),
        compiler_params=pltpu.CompilerParams(
            dimension_semantics=("parallel", "arbitrary"),
            vmem_limit_bytes=32 * 1024 * 1024),
        cost_estimate=pl.CostEstimate(
            flops=R * HW,
            transcendentals=0,
            bytes_accessed=R * HW * itemsize + R * 4),
    )(x2)

    # Tiny epilogue on (N, C) pooled means: channel max + batch softmax.
    # Left to XLA/jnp — a separate pallas_call dispatch + HBM round-trip would
    # be pure fixed overhead for a few hundred FLOPs.
    pooled_nc = pooled.reshape(N, C)
    m = jnp.max(pooled_nc, axis=1, keepdims=True)      # torch.max(x, 1) -> (N, 1)
    att = jax.nn.softmax(m, axis=0)                    # softmax over batch dim
    return att.reshape(N, 1, 1, 1)


def channel_attention_ref(x):
    # Pure-JAX reference mirroring the PyTorch forward.
    pooled = jnp.mean(x, axis=(2, 3), keepdims=True)   # AdaptiveAvgPool2d([1,1])
    m = jnp.max(pooled, axis=1)                        # torch.max(x, 1) -> (N,1,1)
    m = m[..., None]                                   # unsqueeze(3) -> (N,1,1,1)
    return jax.nn.softmax(m, axis=0)                   # softmax over batch dim


if __name__ == "__main__":
    key = jax.random.PRNGKey(0)
    x = jax.random.normal(key, (2, 4, 16, 16), dtype=jnp.float32)

    out = jax.jit(channel_attention)(x)
    out = jax.block_until_ready(out)

    ref = channel_attention_ref(x)
    assert out.shape == (2, 1, 1, 1), out.shape
    assert jnp.allclose(out, ref, atol=1e-5, rtol=1e-5), (out, ref)

    print("KERNEL_OK")
</pallas_src>

<mosaic_0001>
module attributes {stable_mosaic.version = 11 : i64} {
  func.func @pooled_mean_kernel(%arg0: i32, %arg1: i32, %arg2: memref<8x256xf32, #tpu.memory_space<vmem>>, %arg3: memref<8x1xf32, #tpu.memory_space<vmem>>) attributes {dimension_semantics = [#tpu.dimension_semantics<parallel>, #tpu.dimension_semantics<arbitrary>], iteration_bounds = array<i64: 1, 1>, scalar_prefetch = 0 : i64, scratch_operands = 0 : i64, tpu.core_type = #tpu.core_type<tc>, window_params = [{transform_indices = @transform_0, window_bounds = array<i64: 8, 256>}, {transform_indices = @transform_1, window_bounds = array<i64: 8, 1>}]} {
    %c0_i32 = arith.constant 0 : i32
    %0 = arith.cmpi eq, %arg1, %c0_i32 : i32
    %1 = arith.extui %0 : i1 to i32
    %c0_i32_0 = arith.constant 0 : i32
    %2 = arith.cmpi ne, %1, %c0_i32_0 : i32
    scf.if %2 {
      %cst_8 = arith.constant 0.000000e+00 : f32
      %12 = vector.broadcast %cst_8 : f32 to vector<8x1xf32>
      %c0_9 = arith.constant 0 : index
      %c0_10 = arith.constant 0 : index
      %13 = vector.load %arg3[%c0_9, %c0_10] : memref<8x1xf32, #tpu.memory_space<vmem>>, vector<8x1xf32>
      tpu.vector_store %arg3[%c0_9, %c0_10], %12 {strides = array<i32>} : memref<8x1xf32, #tpu.memory_space<vmem>>, vector<8x1xf32>,
    } else {
    }
    %c0 = arith.constant 0 : index
    %c0_1 = arith.constant 0 : index
    %3 = vector.load %arg2[%c0, %c0_1] : memref<8x256xf32, #tpu.memory_space<vmem>>, vector<8x256xf32>
    %c0_2 = arith.constant 0 : index
    %c0_3 = arith.constant 0 : index
    %4 = vector.load %arg3[%c0_2, %c0_3] : memref<8x1xf32, #tpu.memory_space<vmem>>, vector<8x1xf32>
    %cst = arith.constant dense<0.000000e+00> : vector<8xf32>
    %5 = vector.multi_reduction <add>, %3, %cst [1] : vector<8x256xf32> to vector<8xf32>
    %6 = vector.shape_cast %5 : vector<8xf32> to vector<8x1xf32>
    %7 = arith.addf %4, %6 : vector<8x1xf32>
    %c0_4 = arith.constant 0 : index
    %c0_5 = arith.constant 0 : index
    %8 = vector.load %arg3[%c0_4, %c0_5] : memref<8x1xf32, #tpu.memory_space<vmem>>, vector<8x1xf32>
    tpu.vector_store %arg3[%c0_4, %c0_5], %7 {strides = array<i32>} : memref<8x1xf32, #tpu.memory_space<vmem>>, vector<8x1xf32>,
    %c0_i32_6 = arith.constant 0 : i32
    %9 = arith.cmpi eq, %arg1, %c0_i32_6 : i32
    %10 = arith.extui %9 : i1 to i32
    %c0_i32_7 = arith.constant 0 : i32
    %11 = arith.cmpi ne, %10, %c0_i32_7 : i32
    scf.if %11 {
      %c0_8 = arith.constant 0 : index
      %c0_9 = arith.constant 0 : index
      %12 = vector.load %arg3[%c0_8, %c0_9] : memref<8x1xf32, #tpu.memory_space<vmem>>, vector<8x1xf32>
      %cst_10 = arith.constant 3.906250e-03 : f32
      %13 = vector.broadcast %cst_10 : f32 to vector<8x1xf32>
      %14 = arith.mulf %12, %13 : vector<8x1xf32>
      %c0_11 = arith.constant 0 : index
      %c0_12 = arith.constant 0 : index
      %15 = vector.load %arg3[%c0_11, %c0_12] : memref<8x1xf32, #tpu.memory_space<vmem>>, vector<8x1xf32>
      tpu.vector_store %arg3[%c0_11, %c0_12], %14 {strides = array<i32>} : memref<8x1xf32, #tpu.memory_space<vmem>>, vector<8x1xf32>,
    } else {
    }
    return
  }
  func.func @transform_0(%arg0: i32, %arg1: i32) -> (i32, i32) {
    %c0_i32 = arith.constant 0 : i32
    return %arg0, %arg1 : i32, i32
  }
  func.func @transform_1(%arg0: i32, %arg1: i32) -> (i32, i32) {
    %c0_i32 = arith.constant 0 : i32
    %c0_i32_0 = arith.constant 0 : i32
    return %arg0, %c0_i32 : i32, i32
  }
}

</mosaic_0001>

<bundles_post_ra>
// kernel: channel_attention.1
= control target key start
LH: loop header
LB: loop body
LE: loop exit
PB: predicated region body
PF: predicated region fallthrough
CT: control target
= control target key end

     0   :  { %vm12_vm0 = vcmask 7168   ;;  %v34_v2 = vmov 0.0   ;;  %s66_s0 = inlined_call_operand.vmem [shape: f32[8,256], index: 0, kind: input, shape index: {}]   ;;  %s67_s1 = inlined_call_operand.vmem [shape: f32[8,1], index: 1, kind: output, shape index: {}]  }
   0x1   :  { %v14_v0 = vld [vmem:[%s66_s0] sm:$0xff]  ;;  %v15_v1 = vld [vmem:[%s66_s0 + $0x8] sm:$0xff]  ;;  %13 = vst.msk [vmem:[%s67_s1] sm:$0xff] %vm12_vm0, %v34_v2 }
   0x2   :  { %v17_v3 = vadd.f32 %v15_v1, %v14_v0 }
   0x4   :  { %18 = vadd.xlane.f32.xlu0 %v17_v3 }
   0x8   :  { %v16_v4 = vld [vmem:[%s67_s1] sm:$0xff] }
  0x91   :  { %v19_v5 = vpop.xlane.xlu0 %18 }
  0x92   :  { %v20_v6 = vadd.f32 %v19_v5, %v16_v4 }
  0x94   :  { %22 = vst.msk [vmem:[%s67_s1] sm:$0xff] %vm12_vm0, %v20_v6 }
  0x9b   :  { %v26_v7 = vld [vmem:[%s67_s1] sm:$0xff] }
  0x9c   :  { %v27_v8 = vmul.f32 0.00390625, %v26_v7 }
  0x9e   :  { %28 = vst.msk [vmem:[%s67_s1] sm:$0xff] %vm12_vm0, %v27_v8 }

</bundles_post_ra>
